<compile_context>
chip_gen: v5e
topology: v5e:2x2
jax: 0.10.0
libtpu: 0.0.40
codegen_flags: <defaults>
</compile_context>

<pallas_src>
import functools

import jax
import jax.numpy as jnp
from jax.experimental import pallas as pl
from jax.experimental.pallas import tpu as pltpu

BN_EPS = 1e-5


def _round_up(a, b):
    return (a + b - 1) // b * b


def _pick_tiling(N, Cin, Chid, Cout, HW, *,
                 vmem_budget_bytes=8 << 20, max_lanes=16384, max_nb=8):
    """Pick (Nb, tile_m) from a VMEM budget.

    Per-lane f32 footprint of one phase-2 grid step (the larger phase):
      double-buffered x block   : 2 * ceil8(Cin)
      double-buffered out block : 2 * ceil8(Cout)
      hidden slabs (h, hn, g)   : ~3 * Chid
    """
    cin_p = _round_up(Cin, 8)
    cout_p = _round_up(Cout, 8)
    bytes_per_lane = 4 * (2 * cin_p + 2 * cout_p + 3 * Chid)
    lane_budget = max(128, min(max_lanes, vmem_budget_bytes // bytes_per_lane))

    if HW <= lane_budget:
        tile_m = HW                                   # full extent -> always legal
        hw_pad = _round_up(HW, 128)                   # lanes actually occupied in VMEM
        nb = 1
        for d in range(1, min(N, max_nb) + 1):        # fold samples per step
            if N % d == 0 and d * hw_pad <= lane_budget:
                nb = d
    else:
        tile_m = (lane_budget // 128) * 128           # lane-aligned tile, cdiv grid
        nb = 1
    return nb, tile_m


# --------------------------------------------------------------------------- #
# Phase 1: per-step partial x-statistics (xsum, Gram).  BN stats for h = w1@x  #
# are derived from these in the wrapper, so phase 1 is a pure HBM stream plus  #
# one tiny (Cin x Cin) MXU op per sample.                                      #
# --------------------------------------------------------------------------- #
def bn_stats_kernel(x_ref, xsum_ref, gram_ref, *, hw, tile_m, needs_mask):
    nb, cin, tm = x_ref.shape
    xsum = jnp.zeros((cin, 1), jnp.float32)
    gram = jnp.zeros((cin, cin), jnp.float32)

    if needs_mask:
        m0 = pl.program_id(1) * tile_m
        col = jax.lax.broadcasted_iota(jnp.int32, (cin, tm), 1)
        valid = (col + m0) < hw

    for b in range(nb):                               # short static unroll (Nb small)
        xb = x_ref[b].astype(jnp.float32)             # (Cin, tile_m)
        if needs_mask:
            xb = jnp.where(valid, xb, 0.0)            # zero padded tail columns
        xsum = xsum + jnp.sum(xb, axis=1, keepdims=True)
        gram = gram + jax.lax.dot_general(            # xb @ xb.T  (contract lanes)
            xb, xb, (((1,), (1,)), ((), ())),
            preferred_element_type=jnp.float32)

    xsum_ref[...] = xsum
    gram_ref[...] = gram


# --------------------------------------------------------------------------- #
# Phase 2: h = w1@x, folded BN (scale/shift), exact GELU, o = w2@g.            #
# --------------------------------------------------------------------------- #
def mlp_apply_kernel(scale_ref, shift_ref, x_ref, w1_ref, w2_ref, o_ref, *,
                     act_dtype):
    w1 = w1_ref[...].astype(jnp.float32)              # (Chid, Cin)
    w2 = w2_ref[...].astype(act_dtype)                # (Cout, Chid)
    scale = scale_ref[...]                            # (Chid, 1) f32
    shift = shift_ref[...]                            # (Chid, 1) f32
    nb = x_ref.shape[0]

    for b in range(nb):                               # short static unroll
        xb = x_ref[b].astype(jnp.float32)             # (Cin, tile_m)
        h = jnp.dot(w1, xb, preferred_element_type=jnp.float32)   # (Chid, tile_m)
        hn = h * scale + shift                        # BN folded to 2 VPU ops
        g = jax.nn.gelu(hn.astype(act_dtype), approximate=False)  # exact erf GELU
        o_ref[b] = jnp.dot(w2, g,
                           preferred_element_type=jnp.float32).astype(o_ref.dtype)


def mlp_forward(x_nchw, w1, gamma, beta, w2, *,
                vmem_budget_bytes=8 << 20, act_dtype=jnp.float32):
    """x_nchw: (N, Cin, H, W); w1: (Chid, Cin); w2: (Cout, Chid).

    act_dtype=jnp.bfloat16 is the VALU/MXU relief lever on v6e/v7x; the default
    f32 preserves exact-erf parity (and is the right choice on v5e).
    """
    N, Cin, H, W = x_nchw.shape
    Chid = w1.shape[0]
    Cout = w2.shape[0]
    HW = H * W
    M = N * HW

    nb, tile_m = _pick_tiling(N, Cin, Chid, Cout, HW,
                              vmem_budget_bytes=vmem_budget_bytes)
    n_blk = N // nb
    m_blk = pl.cdiv(HW, tile_m)
    needs_mask = (HW % tile_m) != 0

    x3d = x_nchw.reshape(N, Cin, HW)                  # zero-copy reshape

    x_spec = pl.BlockSpec((nb, Cin, tile_m), lambda i, j: (i, 0, j))
    w1_spec = pl.BlockSpec((Chid, Cin), lambda i, j: (0, 0))
    w2_spec = pl.BlockSpec((Cout, Chid), lambda i, j: (0, 0))
    vec_spec = pl.BlockSpec((Chid, 1), lambda i, j: (0, 0))

    cparams = pltpu.CompilerParams(
        dimension_semantics=("parallel", "parallel"),
        vmem_limit_bytes=32 * 1024 * 1024)

    # ---- Phase 1: per-step partial xsum / Gram (fully parallel grid) --------
    stats_cost = pl.CostEstimate(
        flops=2 * Cin * Cin * M + 2 * Cin * M,
        transcendentals=0,
        bytes_accessed=4 * (M * Cin + n_blk * m_blk * (Cin + Cin * Cin)))
    xsum_p, gram_p = pl.pallas_call(
        functools.partial(bn_stats_kernel, hw=HW, tile_m=tile_m,
                          needs_mask=needs_mask),
        grid=(n_blk, m_blk),
        in_specs=[x_spec],
        out_specs=[
            pl.BlockSpec((None, None, Cin, 1), lambda i, j: (i, j, 0, 0)),
            pl.BlockSpec((None, None, Cin, Cin), lambda i, j: (i, j, 0, 0)),
        ],
        out_shape=[
            jax.ShapeDtypeStruct((n_blk, m_blk, Cin, 1), jnp.float32),
            jax.ShapeDtypeStruct((n_blk, m_blk, Cin, Cin), jnp.float32),
        ],
        compiler_params=cparams,
        cost_estimate=stats_cost,
    )(x3d)

    # ---- Wrapper: reduce partials + fold BN into a single scale/shift -------
    # (tiny (Chid x Cin)-sized math, done exactly once in plain XLA)
    w1f = w1.astype(jnp.float32)
    xsum = jnp.sum(xsum_p, axis=(0, 1))                           # (Cin, 1)
    gram = jnp.sum(gram_p, axis=(0, 1))                           # (Cin, Cin)
    h_sum = w1f @ xsum                                            # (Chid, 1)
    h_sumsq = jnp.sum((w1f @ gram) * w1f, axis=1, keepdims=True)  # (Chid, 1)
    inv_m = jnp.float32(1.0 / M)
    mean = h_sum * inv_m
    var = jnp.maximum(h_sumsq * inv_m - mean * mean, 0.0)         # biased var
    scale = gamma.reshape(Chid, 1).astype(jnp.float32) / jnp.sqrt(var + BN_EPS)
    shift = beta.reshape(Chid, 1).astype(jnp.float32) - mean * scale

    # ---- Phase 2: normalize + GELU + second 1x1 conv (fully parallel grid) --
    apply_cost = pl.CostEstimate(
        flops=2 * M * Cin * Chid + 2 * M * Chid * Cout + 10 * M * Chid,
        transcendentals=M * Chid,
        bytes_accessed=4 * (M * Cin + M * Cout + Chid * (Cin + Cout) + 2 * Chid))
    out3d = pl.pallas_call(
        functools.partial(mlp_apply_kernel, act_dtype=act_dtype),
        grid=(n_blk, m_blk),
        in_specs=[vec_spec, vec_spec, x_spec, w1_spec, w2_spec],
        out_specs=pl.BlockSpec((nb, Cout, tile_m), lambda i, j: (i, 0, j)),
        out_shape=jax.ShapeDtypeStruct((N, Cout, HW), x_nchw.dtype),
        compiler_params=cparams,
        cost_estimate=apply_cost,
    )(scale, shift, x3d, w1, w2)

    return out3d.reshape(N, Cout, H, W)               # zero-copy reshape


def mlp_reference(x_nchw, w1, gamma, beta, w2):
    """Pure-JAX reference with identical semantics (for validation)."""
    x = jnp.transpose(x_nchw, (0, 2, 3, 1)).astype(jnp.float32)          # NHWC
    h = jnp.einsum("nhwc,oc->nhwo", x, w1.astype(jnp.float32))
    mean = jnp.mean(h, axis=(0, 1, 2), keepdims=True)
    var = jnp.mean((h - mean) ** 2, axis=(0, 1, 2), keepdims=True)
    hn = (h - mean) / jnp.sqrt(var + BN_EPS) * gamma + beta
    g = jax.nn.gelu(hn, approximate=False)
    o = jnp.einsum("nhwc,oc->nhwo", g, w2.astype(jnp.float32))
    return jnp.transpose(o, (0, 3, 1, 2)).astype(x_nchw.dtype)


if __name__ == "__main__":
    # Small shapes consistent with the module: in_channels=4, hidden=32, out=4
    N, Cin, H, W = 2, 4, 16, 16
    Chid, Cout = 32, 4

    key = jax.random.PRNGKey(0)
    kx, k1, k2 = jax.random.split(key, 3)

    x = jax.random.normal(kx, (N, Cin, H, W), dtype=jnp.float32)

    # Conv2d weights are (out_ch, in_ch, 1, 1); stored squeezed to 2-D.
    w1 = jax.random.uniform(k1, (Chid, Cin), dtype=jnp.float32,
                            minval=-1.0, maxval=1.0) / jnp.sqrt(Cin)
    w2 = jax.random.uniform(k2, (Cout, Chid), dtype=jnp.float32,
                            minval=-1.0, maxval=1.0) / jnp.sqrt(Chid)
    gamma = jnp.ones((Chid,), dtype=jnp.float32)   # BatchNorm2d weight init
    beta = jnp.zeros((Chid,), dtype=jnp.float32)   # BatchNorm2d bias init

    out = mlp_forward(x, w1, gamma, beta, w2)
    out = jax.block_until_ready(out)

    ref = mlp_reference(x, w1, gamma, beta, w2)
    assert out.shape == (N, Cout, H, W), out.shape
    assert jnp.allclose(out, ref, atol=5e-4, rtol=5e-4), "mismatch vs. reference"

    print("KERNEL_OK")
</pallas_src>

<mosaic_0001>
module attributes {stable_mosaic.version = 11 : i64} {
  func.func @bn_stats_kernel(%arg0: i32, %arg1: i32, %arg2: memref<2x4x256xf32, #tpu.memory_space<vmem>>, %arg3: memref<1x1x4x1xf32, #tpu.memory_space<vmem>>, %arg4: memref<1x1x4x4xf32, #tpu.memory_space<vmem>>) attributes {dimension_semantics = [#tpu.dimension_semantics<parallel>, #tpu.dimension_semantics<parallel>], iteration_bounds = array<i64: 1, 1>, scalar_prefetch = 0 : i64, scratch_operands = 0 : i64, tpu.core_type = #tpu.core_type<tc>, window_params = [{transform_indices = @transform_0, window_bounds = array<i64: 2, 4, 256>}, {transform_indices = @transform_1, window_bounds = array<i64: 1, 1, 4, 1>}, {transform_indices = @transform_2, window_bounds = array<i64: 1, 1, 4, 4>}]} {
    %cst = arith.constant 0.000000e+00 : f32
    %0 = vector.broadcast %cst : f32 to vector<4x1xf32>
    %cst_0 = arith.constant 0.000000e+00 : f32
    %1 = vector.broadcast %cst_0 : f32 to vector<4x4xf32>
    %c0 = arith.constant 0 : index
    %c0_1 = arith.constant 0 : index
    %c0_2 = arith.constant 0 : index
    %2 = vector.load %arg2[%c0, %c0_1, %c0_2] : memref<2x4x256xf32, #tpu.memory_space<vmem>>, vector<1x4x256xf32>
    %3 = vector.shape_cast %2 : vector<1x4x256xf32> to vector<4x256xf32>
    %cst_3 = arith.constant dense<0.000000e+00> : vector<4xf32>
    %4 = vector.multi_reduction <add>, %3, %cst_3 [1] : vector<4x256xf32> to vector<4xf32>
    %5 = vector.shape_cast %4 : vector<4xf32> to vector<4x1xf32>
    %6 = arith.addf %0, %5 : vector<4x1xf32>
    %cst_4 = arith.constant dense<0.000000e+00> : vector<4x4xf32>
    %7 = tpu.matmul %3, %3, %cst_4 {dimension_numbers = #tpu.dot_dimension_numbers<[1], [1], [0], [0], [0, 0, 1, 0], [], []>} : vector<4x256xf32>, vector<4x256xf32>, vector<4x4xf32> -> vector<4x4xf32>
    %8 = arith.addf %1, %7 : vector<4x4xf32>
    %c1 = arith.constant 1 : index
    %c0_5 = arith.constant 0 : index
    %c0_6 = arith.constant 0 : index
    %9 = vector.load %arg2[%c1, %c0_5, %c0_6] : memref<2x4x256xf32, #tpu.memory_space<vmem>>, vector<1x4x256xf32>
    %10 = vector.shape_cast %9 : vector<1x4x256xf32> to vector<4x256xf32>
    %cst_7 = arith.constant dense<0.000000e+00> : vector<4xf32>
    %11 = vector.multi_reduction <add>, %10, %cst_7 [1] : vector<4x256xf32> to vector<4xf32>
    %12 = vector.shape_cast %11 : vector<4xf32> to vector<4x1xf32>
    %13 = arith.addf %6, %12 : vector<4x1xf32>
    %cst_8 = arith.constant dense<0.000000e+00> : vector<4x4xf32>
    %14 = tpu.matmul %10, %10, %cst_8 {dimension_numbers = #tpu.dot_dimension_numbers<[1], [1], [0], [0], [0, 0, 1, 0], [], []>} : vector<4x256xf32>, vector<4x256xf32>, vector<4x4xf32> -> vector<4x4xf32>
    %15 = arith.addf %8, %14 : vector<4x4xf32>
    %c0_9 = arith.constant 0 : index
    %c0_10 = arith.constant 0 : index
    %c0_11 = arith.constant 0 : index
    %c0_12 = arith.constant 0 : index
    %16 = vector.load %arg3[%c0_9, %c0_10, %c0_11, %c0_12] : memref<1x1x4x1xf32, #tpu.memory_space<vmem>>, vector<1x1x4x1xf32>
    %17 = vector.shape_cast %16 : vector<1x1x4x1xf32> to vector<4x1xf32>
    %18 = vector.shape_cast %13 : vector<4x1xf32> to vector<1x1x4x1xf32>
    tpu.vector_store %arg3[%c0_9, %c0_10, %c0_11, %c0_12], %18 {strides = array<i32>} : memref<1x1x4x1xf32, #tpu.memory_space<vmem>>, vector<1x1x4x1xf32>,
    %c0_13 = arith.constant 0 : index
    %c0_14 = arith.constant 0 : index
    %c0_15 = arith.constant 0 : index
    %c0_16 = arith.constant 0 : index
    %19 = vector.load %arg4[%c0_13, %c0_14, %c0_15, %c0_16] : memref<1x1x4x4xf32, #tpu.memory_space<vmem>>, vector<1x1x4x4xf32>
    %20 = vector.shape_cast %19 : vector<1x1x4x4xf32> to vector<4x4xf32>
    %21 = vector.shape_cast %15 : vector<4x4xf32> to vector<1x1x4x4xf32>
    tpu.vector_store %arg4[%c0_13, %c0_14, %c0_15, %c0_16], %21 {strides = array<i32>} : memref<1x1x4x4xf32, #tpu.memory_space<vmem>>, vector<1x1x4x4xf32>,
    return
  }
  func.func @transform_0(%arg0: i32, %arg1: i32) -> (i32, i32, i32) {
    %c0_i32 = arith.constant 0 : i32
    %c0_i32_0 = arith.constant 0 : i32
    return %arg0, %c0_i32, %arg1 : i32, i32, i32
  }
  func.func @transform_1(%arg0: i32, %arg1: i32) -> (i32, i32, i32, i32) {
    %c0_i32 = arith.constant 0 : i32
    %c0_i32_0 = arith.constant 0 : i32
    %c0_i32_1 = arith.constant 0 : i32
    return %arg0, %arg1, %c0_i32, %c0_i32_0 : i32, i32, i32, i32
  }
  func.func @transform_2(%arg0: i32, %arg1: i32) -> (i32, i32, i32, i32) {
    %c0_i32 = arith.constant 0 : i32
    %c0_i32_0 = arith.constant 0 : i32
    %c0_i32_1 = arith.constant 0 : i32
    return %arg0, %arg1, %c0_i32, %c0_i32_0 : i32, i32, i32, i32
  }
}

</mosaic_0001>

<bundles_post_ra>
// kernel: tpu_custom_call.1
= control target key start
LH: loop header
LB: loop body
LE: loop exit
PB: predicated region body
PF: predicated region fallthrough
CT: control target
= control target key end

     0   :  { %8 = vsyncpa [#allocation3], 0  ;;  %s264_s0 = inlined_call_operand.hbm [shape: f32[2,4,256], index: 0, kind: input, shape index: {}]   ;;  %s265_s1 = inlined_call_operand.vmem [shape: f32[1,1,4,1], index: 1, kind: output, shape index: {0}]   ;;  %s266_s2 = inlined_call_operand.hbm [shape: f32[1,1,4,4], index: 2, kind: output, shape index: {1}]  }
   0x1   :  { %9 = vsyncpa [#allocation4], 0  ;;  %s14_s11 = sshll.u32 %s264_s0, 4  ;;  %s236_s12 = smov [#allocation2]   ;;  %s15_s11 = int_to_ptr.hbm [resolvable:$true] %s14_s11 }
   0x2   :  { %s16_s13 = sshll.u32 %s236_s12, 4  ;;  %s237_s14 = smov 128   ;;  %s17_s13 = int_to_ptr.vmem [resolvable:$true] %s16_s13 }
   0x3   :  { %s238_s15 = smov 8  }
   0x4   :  { %22 = dma.hbm_to_vmem [thread:$0]  %s15_s11, 256, %s17_s13, [#allocation3], %s237_s14, %s237_s14, %s238_s15  }
   0x5   :  { %232 = dma.done.wait [#allocation3], 256  }
   0x6   :  { %233 = vsyncadd [#allocation3], 4294967040  ;;  %v27_v0 = vld [vmem:[#allocation2] sm:$0xff]  ;;  %v42_v1 = vld [vmem:[#allocation2 + $0x8] sm:$0xff]  ;;  %vm34_vm0 = vcmask 1043456   ;;  %vm155_vm1 = vcmask 3072  }
   0x7   :  { %29 = vst [vmem:[#allocation1] ss:$2 sm:$0xff] %v27_v0  ;;  %s239_s17 = smov [#allocation5]   ;;  %s168_s21 = sshll.u32 %s266_s2, 4  ;;  %vm157_vm2 = vcmask 27648   ;;  %s169_s21 = int_to_ptr.hbm [resolvable:$true] %s168_s21 }
   0x8   :  { %s166_s18 = sshll.u32 %s239_s17, 4  ;;  %s167_s18 = int_to_ptr.vmem [resolvable:$true] %s166_s18 }
   0xe   :  { %v30_v2 = vld.sshfl [vmem:[#allocation1] sm:$0xff pattern:$0x75316420]  ;;  %v31_v3 = vld.sshfl [vmem:[#allocation1 + $0x8] sm:$0xff pattern:$0x75316420] }
   0xf   :  { %44 = vst [vmem:[#allocation1] ss:$2 sm:$0xff] %v42_v1  ;;  %v35_v6 = vsel %vm34_vm0, %v30_v2, 0.0  ;;  %v36_v7 = vsel %vm34_vm0, %v31_v3, 0.0 }
  0x10   :  { %v37_v8 = vadd.f32 %v36_v7, %v35_v6 }
  0x12   :  { %38 = vadd.xlane.f32.xlu0 %v37_v8 }
  0x16   :  { %v45_v4 = vld.sshfl [vmem:[#allocation1] sm:$0xff pattern:$0x75316420]  ;;  %v46_v5 = vld.sshfl [vmem:[#allocation1 + $0x8] sm:$0xff pattern:$0x75316420] }
  0x17   :  { %55 = vst [vmem:[#allocation1] ss:$2 sm:$0xff] %v42_v1  ;;  %v49_v9 = vsel %vm34_vm0, %v45_v4, 0.0  ;;  %v50_v10 = vsel %vm34_vm0, %v46_v5, 0.0 }
  0x18   :  { %v51_v13 = vadd.f32 %v50_v10, %v49_v9 }
  0x1a   :  { %52 = vadd.xlane.f32.xlu0 %v51_v13 }
  0x1e   :  { %v56_v11 = vld.sshfl [vmem:[#allocation1] sm:$0xff pattern:$0x75316420]  ;;  %v57_v12 = vld.sshfl [vmem:[#allocation1 + $0x8] sm:$0xff pattern:$0x75316420] }
  0x1f   :  { %60 = vst [vmem:[#allocation1] ss:$2 sm:$0xff] %v42_v1 }
  0x26   :  { %v61_v14 = vld.sshfl [vmem:[#allocation1] sm:$0xff pattern:$0x75316420]  ;;  %v62_v15 = vld.sshfl [vmem:[#allocation1 + $0x8] sm:$0xff pattern:$0x75316420] }
  0x27   :  { %105 = vst [vmem:[#allocation1] ss:$2 sm:$0xff] %v27_v0  ;;  %80 = vmatpush.xpose.msra.mxu0 %v61_v14  ;;  %100 = vmatpush.xpose.msra.mxu1 %v62_v15 }
  0x2a   :  { %81 = vmatmul.f32.vlgmr.msra.gmra.mxu0 %v56_v11  ;;  %101 = vmatmul.f32.vlgmr.msra.gmra.mxu1 %v57_v12 }
  0x2e   :  { %v106_v16 = vld.sshfl [vmem:[#allocation1] sm:$0xff pattern:$0x75316420]  ;;  %v107_v17 = vld.sshfl [vmem:[#allocation1 + $0x8] sm:$0xff pattern:$0x75316420] }
  0x2f   :  { %110 = vst [vmem:[#allocation1] ss:$2 sm:$0xff] %v27_v0 }
  0x36   :  { %v111_v18 = vld.sshfl [vmem:[#allocation1] sm:$0xff pattern:$0x75316420]  ;;  %v112_v19 = vld.sshfl [vmem:[#allocation1 + $0x8] sm:$0xff pattern:$0x75316420] }
  0x37   :  { %130 = vmatpush.xpose.msra.mxu2 %v111_v18  ;;  %150 = vmatpush.xpose.msra.mxu3 %v112_v19 }
  0x3a   :  { %131 = vmatmul.f32.vlgmr.msra.gmra.mxu2 %v106_v16  ;;  %151 = vmatmul.f32.vlgmr.msra.gmra.mxu3 %v107_v17 }
  0x85   :  { %v39_v20 = vpop.xlane.xlu0 %38 }
  0x8d   :  { %v53_v21 = vpop.xlane.xlu0 %52 }
  0x8e   :  { %v54_v22 = vadd.f32 %v53_v21, %v39_v20 }
  0x90   :  { %156 = vst.msk [vmem:[%s265_s1] sm:$0xf] %vm155_vm1, %v54_v22 }
  0xa7   :  { %v82_v23 = vpop.f32.mrf.mxu0  ;;  %v102_v24 = vpop.f32.mrf.mxu1 }
  0xa8   :  { %v103_v25 = vadd.f32 %v102_v24, %v82_v23 }
  0xbd   :  { %v132_v26 = vpop.f32.mrf.mxu2  ;;  %v152_v27 = vpop.f32.mrf.mxu3 }
  0xbe   :  { %v133_v28 = vadd.f32 %v132_v26, %v103_v25 }
  0xc0   :  { %v153_v29 = vadd.f32 %v152_v27, %v133_v28 }
  0xc2   :  { %158 = vst.msk [vmem:[#allocation5] sm:$0xf] %vm157_vm2, %v153_v29 }
  0xc3   :  { %171 = dma.vmem_to_hbm [thread:$0]  %s167_s18, 64, %s169_s21, [#allocation4]  }
  0xc4   :  { %234 = dma.done.wait [#allocation4], 64  }
  0xc5   :  { %235 = vsyncadd [#allocation4], 4294967232 }
  0xc6   :  { %178 = vsyncpa [#allocation3], 1 }
  0xc7   :  { %179 = vsyncpa [#allocation4], 1 }

</bundles_post_ra>
